<compile_context>
chip_gen: v5e
topology: v5e:2x2
jax: 0.10.0
libtpu: 0.0.40
codegen_flags: <defaults>
</compile_context>

<pallas_src>
import math
import re
import functools

import jax
import jax.numpy as jnp
from jax import lax
from jax.experimental import pallas as pl
from jax.experimental.pallas import tpu as pltpu

MIN_NORM = 1e-15
MIN_SQ = MIN_NORM * MIN_NORM       # ~1e-30, still a normal float32
EPS_F32 = 4e-3                     # PoincareBall.eps[torch.float32]
ARTANH_CLIP = 1.0 - 1e-7           # float32-representable margin


def _round_up(v, m):
    return (v + m - 1) // m * m


def _artanh(z):
    z = jnp.clip(z, -ARTANH_CLIP, ARTANH_CLIP)
    return 0.5 * jnp.log((1.0 + z) / (1.0 - z))


def _tanh(z):
    return jnp.tanh(jnp.clip(z, -15.0, 15.0))


def _proj(x, c, sqrt_c):
    """PoincareBall.proj: pull points with ||x|| > maxnorm back inside the ball."""
    x_sq = jnp.maximum(jnp.sum(x * x, axis=-1, keepdims=True), MIN_SQ)
    norm = jnp.sqrt(x_sq)
    inv_norm = lax.rsqrt(x_sq)
    maxnorm = (1.0 - EPS_F32) / sqrt_c
    scale = jnp.where(norm > maxnorm, maxnorm * inv_norm, 1.0)
    return x * scale


def _tpu_generation():
    try:
        kind = jax.devices()[0].device_kind.lower()
    except Exception:
        return 0
    m = re.search(r"(\d+)", kind)
    return int(m.group(1)) if m else 0


def _gen_defaults(gen):
    if gen >= 7:   # v7x: 64 MiB VMEM/TC, ~3.2 TB/s HBM -> tile_n ~512 hits the roofline
        return dict(tile_n=512, vmem_cap=56 << 20, mxu=256)
    if gen == 6:   # v6e: needs ~650+ FLOP/byte to be MXU-bound on streamed weights
        return dict(tile_n=1024, vmem_cap=100 << 20, mxu=256)
    if gen == 5:   # v5e: ~240 FLOP/byte roofline; scoped-VMEM default is tiny, so always override
        return dict(tile_n=384, vmem_cap=100 << 20, mxu=128)
    return dict(tile_n=256, vmem_cap=48 << 20, mxu=128)


# --------------------------------- kernel ---------------------------------

def _hyp_linear_kernel(x_ref, xsq_ref, wt_ref, hb_ref, y2_ref, o_ref, acc_ref, *, c):
    """Grid = (row tiles [parallel], K tiles [arbitrary, innermost])."""
    k = pl.program_id(1)

    @pl.when(k == 0)
    def _init():
        acc_ref[...] = jnp.zeros_like(acc_ref)

    # Hot loop: pure MXU feed -- native-dtype operands, f32 accumulation, no transpose.
    acc_ref[...] += jnp.dot(x_ref[...], wt_ref[...], preferred_element_type=jnp.float32)

    @pl.when(k == pl.num_programs(1) - 1)
    def _epilogue():
        sqrt_c = math.sqrt(c)
        inv_sqrt_c = 1.0 / sqrt_c
        maxnorm = (1.0 - EPS_F32) / sqrt_c

        mx = acc_ref[...]                       # (tile_n, out_p) f32
        hyp_b = hb_ref[...]                     # (1, out_p) f32, precomputed on host
        y2 = y2_ref[...]                        # (1, 1) f32 = ||hyp_b||^2, host-computed

        x_sq = jnp.maximum(xsq_ref[...], MIN_SQ)        # (tile_n, 1), host-computed
        x_norm = jnp.sqrt(x_sq)
        inv_x_norm = lax.rsqrt(x_sq)

        # The only two full-width row reductions in the whole epilogue.
        mx_sq_raw = jnp.sum(mx * mx, axis=-1, keepdims=True)
        mxb = jnp.sum(mx * hyp_b, axis=-1, keepdims=True)

        mx_sq = jnp.maximum(mx_sq_raw, MIN_SQ)
        mx_norm = jnp.sqrt(mx_sq)
        inv_mx_norm = lax.rsqrt(mx_sq)

        # ---- mobius_matvec scale (per-row scalar s1) ----
        # zero-row test via ||mx||^2 == 0: differs from all(mx == 0) only if every
        # per-element square underflows in f32 (accepted edge case).
        s1 = _tanh(mx_norm * inv_x_norm * _artanh(sqrt_c * x_norm)) * (inv_mx_norm * inv_sqrt_c)
        s1 = jnp.where(mx_sq_raw == 0.0, 0.0, s1)

        # ---- proj(mv): ||mv||^2 = ||mx||^2 * s1^2 -> scalar algebra ----
        mv_sq = jnp.maximum(mx_sq_raw * (s1 * s1), MIN_SQ)
        s2 = jnp.where(jnp.sqrt(mv_sq) > maxnorm, maxnorm * lax.rsqrt(mv_sq), 1.0)
        s12 = s1 * s2                           # res = mx * s12

        # ---- mobius_add(res, hyp_b): x2, xy, y2 are per-row scalars ----
        x2 = mx_sq_raw * (s12 * s12)
        xy = mxb * s12
        denom = jnp.maximum(1.0 + 2.0 * c * xy + (c * c) * x2 * y2, MIN_NORM)
        inv_denom = pl.reciprocal(denom)        # exact (approx would break 1e-4 tol)
        alpha = (1.0 + 2.0 * c * xy + c * y2) * inv_denom
        beta = (1.0 - c * x2) * inv_denom

        # out = alpha*res + beta*hyp_b; ||out||^2 from scalar algebra (no full reduce).
        out_sq = jnp.maximum(alpha * alpha * x2 + 2.0 * alpha * beta * xy
                             + beta * beta * y2, MIN_SQ)
        s3 = jnp.where(jnp.sqrt(out_sq) > maxnorm, maxnorm * lax.rsqrt(out_sq), 1.0)

        o_ref[...] = ((s3 * alpha * s12) * mx + (s3 * beta) * hyp_b).astype(o_ref.dtype)


# --------------------------------- wrapper ---------------------------------

def prepare_hyp_linear(weight, bias, c, *, use_bias=True, gen=None, vmem_cap=None):
    """Pad/transpose the weight and precompute the hyperbolic bias ONCE.

    Cache the returned params across forward calls (param-init time); redoing the
    transpose+pad per call costs a full weight-sized HBM pass.
    """
    out_f, in_f = weight.shape
    c = float(c)
    sqrt_c = math.sqrt(c)
    if gen is None:
        gen = _tpu_generation()
    d = _gen_defaults(gen)
    if vmem_cap is None:
        vmem_cap = d["vmem_cap"]
    mxu = d["mxu"]

    lane_mult = mxu if out_f > 128 else 128       # fill 256x256 MXU tiles on v6e/v7x
    k_mult = mxu if in_f > 128 else 128
    out_f_p = _round_up(out_f, lane_mult)

    bpe_w = weight.dtype.itemsize
    in_f_p0 = _round_up(in_f, k_mult)
    w_bytes = in_f_p0 * out_f_p * bpe_w
    if w_bytes <= vmem_cap // 3:
        tile_k = in_f_p0                          # whole weight resident across row tiles
    else:
        tile_k = min(_round_up(512, k_mult), in_f_p0)
        while 2 * tile_k * out_f_p * bpe_w > vmem_cap // 2 and tile_k > 128:
            tile_k //= 2
        tile_k = max(tile_k, 128)
    in_f_p = _round_up(in_f, tile_k)

    # Pre-transpose once to (in_f, out_f): kernel does jnp.dot(x, w) directly.
    # Zero padding is mathematically exact for every op in this layer.
    wt_p = jnp.pad(weight.T, ((0, in_f_p - in_f), (0, out_f_p - out_f)))

    # Grid-invariant bias branch (proj_tan0 -> expmap0 -> proj) hoisted to the host.
    # A zero bias reproduces the use_bias=False path exactly (mobius_add with 0).
    if use_bias:
        b = bias.reshape(1, out_f).astype(jnp.float32)
    else:
        b = jnp.zeros((1, out_f), jnp.float32)
    b_sq = jnp.maximum(jnp.sum(b * b, axis=-1, keepdims=True), MIN_SQ)
    hyp_b = _tanh(sqrt_c * jnp.sqrt(b_sq)) * b * (lax.rsqrt(b_sq) / sqrt_c)    # expmap0
    hyp_b = _proj(hyp_b, c, sqrt_c)
    y2 = jnp.sum(hyp_b * hyp_b, axis=-1, keepdims=True)                        # (1, 1)
    hb_p = jnp.pad(hyp_b, ((0, 0), (0, out_f_p - out_f)))

    return dict(wt_p=wt_p, hb_p=hb_p, y2=y2, c=c,
                in_f=in_f, out_f=out_f, in_f_p=in_f_p, out_f_p=out_f_p,
                tile_k=tile_k, gen=gen, vmem_cap=vmem_cap,
                default_tile_n=d["tile_n"])


def _vmem_requirement(tile_n, tile_k, out_f_p, bpe_x, bpe_w, bpe_o):
    x_tile = 2 * tile_n * tile_k * bpe_x          # double-buffered x tile
    xsq_tile = 2 * tile_n * 128 * 4               # (tile_n, 1) pads to 128 lanes
    w_slab = 2 * tile_k * out_f_p * bpe_w         # double-buffered weight slab
    hb_tile = 2 * 8 * out_f_p * 4
    y2_tile = 2 * 8 * 128 * 4
    out_tile = 2 * tile_n * out_f_p * bpe_o
    acc = tile_n * out_f_p * 4                    # f32 accumulator scratch
    return x_tile + xsq_tile + w_slab + hb_tile + y2_tile + out_tile + acc


def hyp_linear_apply(x, params, *, tile_n=None, vmem_limit_bytes=None):
    """x: (N, in_f) -> (N, out_f)."""
    n, in_f = x.shape
    assert in_f == params["in_f"]
    c = params["c"]
    in_f_p, out_f_p = params["in_f_p"], params["out_f_p"]
    tile_k = params["tile_k"]
    out_f = params["out_f"]
    vmem_cap = params["vmem_cap"]

    bpe_x = x.dtype.itemsize
    bpe_w = params["wt_p"].dtype.itemsize
    sublane = max(8, 32 // max(bpe_x, 1))         # 8 f32 / 16 bf16 / 32 int8|fp8

    if tile_n is None:
        tile_n = params["default_tile_n"]
    tile_n = min(tile_n, _round_up(n, sublane))
    tile_n = _round_up(tile_n, sublane)

    # Shrink tile_n until the double-buffered pipeline fits the per-gen VMEM budget.
    while (_vmem_requirement(tile_n, tile_k, out_f_p, bpe_x, bpe_w, bpe_x) > vmem_cap
           and tile_n > sublane):
        tile_n = max(sublane, _round_up(tile_n // 2, sublane))
    n_p = _round_up(n, tile_n)

    # v7x: keep >= 2 row tiles so the 'parallel' axis can feed both TensorCores.
    if params["gen"] >= 7:
        while n_p // tile_n < 2 and tile_n > sublane:
            tile_n = max(sublane, _round_up(tile_n // 2, sublane))
            n_p = _round_up(n, tile_n)

    req = _vmem_requirement(tile_n, tile_k, out_f_p, bpe_x, bpe_w, bpe_x)
    if vmem_limit_bytes is None:
        vmem_limit_bytes = min(vmem_cap, max(int(req * 1.2) + (2 << 20), 16 << 20))

    # Hoisted ||x||^2: one fused reduce over the UNPADDED x, outside the hot loop.
    xsq = jnp.sum(x.astype(jnp.float32) * x.astype(jnp.float32), axis=-1, keepdims=True)
    x_p = jnp.pad(x, ((0, n_p - n), (0, in_f_p - in_f)))
    xsq_p = jnp.pad(xsq, ((0, n_p - n), (0, 0)))

    grid = (n_p // tile_n, in_f_p // tile_k)
    kernel = functools.partial(_hyp_linear_kernel, c=c)

    y_p = pl.pallas_call(
        kernel,
        out_shape=jax.ShapeDtypeStruct((n_p, out_f_p), x.dtype),
        grid_spec=pltpu.PrefetchScalarGridSpec(
            num_scalar_prefetch=0,
            grid=grid,
            in_specs=[
                pl.BlockSpec((tile_n, tile_k), lambda i, k: (i, k)),     # x row/K tile
                pl.BlockSpec((tile_n, 1), lambda i, k: (i, 0)),          # ||x||^2 (host)
                pl.BlockSpec((tile_k, out_f_p), lambda i, k: (k, 0)),    # W^T K-slab
                pl.BlockSpec((1, out_f_p), lambda i, k: (0, 0)),         # hyperbolic bias
                pl.BlockSpec((1, 1), lambda i, k: (0, 0)),               # ||hyp_b||^2
            ],
            out_specs=pl.BlockSpec((tile_n, out_f_p), lambda i, k: (i, 0)),
            scratch_shapes=[pltpu.VMEM((tile_n, out_f_p), jnp.float32)], # matmul acc
        ),
        compiler_params=pltpu.CompilerParams(
            dimension_semantics=("parallel", "arbitrary"),
            vmem_limit_bytes=int(vmem_limit_bytes),
        ),
    )(x_p, xsq_p, params["wt_p"], params["hb_p"], params["y2"])

    return y_p[:n, :out_f]


def hyp_linear(x, weight, bias, c, *, use_bias=True, tile_n=None, vmem_limit_bytes=None):
    """Convenience path: prepare (should be cached in real use) + apply."""
    params = prepare_hyp_linear(weight, bias, c, use_bias=use_bias)
    return hyp_linear_apply(x, params, tile_n=tile_n, vmem_limit_bytes=vmem_limit_bytes)


# ---------------- pure-JAX reference (mirrors the torch module, eval mode) ----------------
def _ref_hyp_linear(x, weight, bias, c):
    sqrt_c = math.sqrt(c)
    x = x.astype(jnp.float32)
    w = weight.astype(jnp.float32)
    b = bias.reshape(1, -1).astype(jnp.float32)

    x_norm = jnp.maximum(jnp.linalg.norm(x, axis=-1, keepdims=True), MIN_NORM)
    mx = x @ w.T
    mx_norm = jnp.maximum(jnp.linalg.norm(mx, axis=-1, keepdims=True), MIN_NORM)
    res_c = _tanh(mx_norm / x_norm * _artanh(sqrt_c * x_norm)) * mx / (mx_norm * sqrt_c)
    mv = jnp.where(jnp.all(mx == 0.0, axis=-1, keepdims=True), 0.0, res_c)
    res = _proj(mv, c, sqrt_c)

    b_norm = jnp.maximum(jnp.linalg.norm(b, axis=-1, keepdims=True), MIN_NORM)
    hyp_b = _proj(_tanh(sqrt_c * b_norm) * b / (sqrt_c * b_norm), c, sqrt_c)

    x2 = jnp.sum(res * res, -1, keepdims=True)
    y2 = jnp.sum(hyp_b * hyp_b, -1, keepdims=True)
    xy = jnp.sum(res * hyp_b, -1, keepdims=True)
    num = (1 + 2 * c * xy + c * y2) * res + (1 - c * x2) * hyp_b
    denom = jnp.maximum(1 + 2 * c * xy + c * c * x2 * y2, MIN_NORM)
    return _proj(num / denom, c, sqrt_c)


if __name__ == "__main__":
    # TODO(synk): F.dropout on the weight (training-mode only) is not applied here;
    # this implements the eval-mode forward (dropout is identity).
    key = jax.random.PRNGKey(0)

    def run_case(n, in_f, out_f, c, kx, kw, kb):
        x = 0.1 * jax.random.normal(kx, (n, in_f), dtype=jnp.float32)
        # Parameter init mirroring reset_parameters(): xavier_uniform_(gain=sqrt(2)), bias ~ small
        gain = math.sqrt(2.0)
        bound = gain * math.sqrt(6.0 / (in_f + out_f))
        weight = jax.random.uniform(kw, (out_f, in_f), dtype=jnp.float32,
                                    minval=-bound, maxval=bound)
        bias = 0.01 * jax.random.normal(kb, (out_f,), dtype=jnp.float32)

        out = jax.block_until_ready(hyp_linear(x, weight, bias, c))
        ref = _ref_hyp_linear(x, weight, bias, c)
        assert out.shape == (n, out_f)
        err = float(jnp.max(jnp.abs(out - ref)))
        assert jnp.allclose(out, ref, rtol=1e-4, atol=1e-4), f"max |err| = {err}"

    ks = jax.random.split(key, 6)
    run_case(16, 32, 32, 1.0, ks[0], ks[1], ks[2])   # aligned small case
    run_case(10, 20, 24, 0.5, ks[3], ks[4], ks[5])   # non-aligned shapes / c != 1 path

    print("KERNEL_OK")
</pallas_src>

<mosaic_0001>
module attributes {stable_mosaic.version = 11 : i64} {
  func.func @_hyp_linear_kernel(%arg0: i32, %arg1: i32, %arg2: memref<16x128xf32, #tpu.memory_space<vmem>>, %arg3: memref<16x1xf32, #tpu.memory_space<vmem>>, %arg4: memref<128x128xf32, #tpu.memory_space<vmem>>, %arg5: memref<1x128xf32, #tpu.memory_space<vmem>>, %arg6: memref<1x1xf32, #tpu.memory_space<vmem>>, %arg7: memref<16x128xf32, #tpu.memory_space<vmem>>, %arg8: memref<16x128xf32, #tpu.memory_space<vmem>>) attributes {dimension_semantics = [#tpu.dimension_semantics<parallel>, #tpu.dimension_semantics<arbitrary>], iteration_bounds = array<i64: 1, 1>, scalar_prefetch = 0 : i64, scratch_operands = 1 : i64, tpu.core_type = #tpu.core_type<tc>, window_params = [{transform_indices = @transform_0, window_bounds = array<i64: 16, 128>}, {transform_indices = @transform_1, window_bounds = array<i64: 16, 1>}, {transform_indices = @transform_2, window_bounds = array<i64: 128, 128>}, {pipeline_mode = #tpu.pipeline_mode<synchronous>, transform_indices = @transform_3, window_bounds = array<i64: 1, 128>}, {pipeline_mode = #tpu.pipeline_mode<synchronous>, transform_indices = @transform_4, window_bounds = array<i64: 1, 1>}, {transform_indices = @transform_5, window_bounds = array<i64: 16, 128>}]} {
    %c0_i32 = arith.constant 0 : i32
    %0 = arith.cmpi eq, %arg1, %c0_i32 : i32
    %1 = arith.extui %0 : i1 to i32
    %c0_i32_0 = arith.constant 0 : i32
    %2 = arith.cmpi ne, %1, %c0_i32_0 : i32
    scf.if %2 {
      %cst_10 = arith.constant 0.000000e+00 : f32
      %12 = vector.broadcast %cst_10 : f32 to vector<16x128xf32>
      %c0_11 = arith.constant 0 : index
      %c0_12 = arith.constant 0 : index
      %13 = vector.load %arg8[%c0_11, %c0_12] : memref<16x128xf32, #tpu.memory_space<vmem>>, vector<16x128xf32>
      tpu.vector_store %arg8[%c0_11, %c0_12], %12 {strides = array<i32>} : memref<16x128xf32, #tpu.memory_space<vmem>>, vector<16x128xf32>,
    } else {
    }
    %c0 = arith.constant 0 : index
    %c0_1 = arith.constant 0 : index
    %3 = vector.load %arg8[%c0, %c0_1] : memref<16x128xf32, #tpu.memory_space<vmem>>, vector<16x128xf32>
    %c0_2 = arith.constant 0 : index
    %c0_3 = arith.constant 0 : index
    %4 = vector.load %arg2[%c0_2, %c0_3] : memref<16x128xf32, #tpu.memory_space<vmem>>, vector<16x128xf32>
    %c0_4 = arith.constant 0 : index
    %c0_5 = arith.constant 0 : index
    %5 = vector.load %arg4[%c0_4, %c0_5] : memref<128x128xf32, #tpu.memory_space<vmem>>, vector<128x128xf32>
    %cst = arith.constant dense<0.000000e+00> : vector<16x128xf32>
    %6 = tpu.matmul %4, %5, %cst {dimension_numbers = #tpu.dot_dimension_numbers<[1], [0], [0], [1], [0, 0, 1, 1], [], []>} : vector<16x128xf32>, vector<128x128xf32>, vector<16x128xf32> -> vector<16x128xf32>
    %7 = arith.addf %3, %6 : vector<16x128xf32>
    %c0_6 = arith.constant 0 : index
    %c0_7 = arith.constant 0 : index
    %8 = vector.load %arg8[%c0_6, %c0_7] : memref<16x128xf32, #tpu.memory_space<vmem>>, vector<16x128xf32>
    tpu.vector_store %arg8[%c0_6, %c0_7], %7 {strides = array<i32>} : memref<16x128xf32, #tpu.memory_space<vmem>>, vector<16x128xf32>,
    %c0_i32_8 = arith.constant 0 : i32
    %9 = arith.cmpi eq, %arg1, %c0_i32_8 : i32
    %10 = arith.extui %9 : i1 to i32
    %c0_i32_9 = arith.constant 0 : i32
    %11 = arith.cmpi ne, %10, %c0_i32_9 : i32
    scf.if %11 {
      %c0_10 = arith.constant 0 : index
      %c0_11 = arith.constant 0 : index
      %12 = vector.load %arg8[%c0_10, %c0_11] : memref<16x128xf32, #tpu.memory_space<vmem>>, vector<16x128xf32>
      %c0_12 = arith.constant 0 : index
      %c0_13 = arith.constant 0 : index
      %13 = vector.load %arg5[%c0_12, %c0_13] : memref<1x128xf32, #tpu.memory_space<vmem>>, vector<1x128xf32>
      %c0_14 = arith.constant 0 : index
      %c0_15 = arith.constant 0 : index
      %14 = vector.load %arg6[%c0_14, %c0_15] : memref<1x1xf32, #tpu.memory_space<vmem>>, vector<1x1xf32>
      %c0_16 = arith.constant 0 : index
      %c0_17 = arith.constant 0 : index
      %15 = vector.load %arg3[%c0_16, %c0_17] : memref<16x1xf32, #tpu.memory_space<vmem>>, vector<16x1xf32>
      %cst_18 = arith.constant 1.000000e-30 : f32
      %16 = vector.broadcast %cst_18 : f32 to vector<16x1xf32>
      %17 = arith.maximumf %15, %16 : vector<16x1xf32>
      %18 = math.sqrt %17 : vector<16x1xf32>
      %19 = math.rsqrt %17 : vector<16x1xf32>
      %20 = arith.mulf %12, %12 : vector<16x128xf32>
      %cst_19 = arith.constant dense<0.000000e+00> : vector<16xf32>
      %21 = vector.multi_reduction <add>, %20, %cst_19 [1] : vector<16x128xf32> to vector<16xf32>
      %22 = vector.shape_cast %21 : vector<16xf32> to vector<16x1xf32>
      %23 = vector.broadcast %13 : vector<1x128xf32> to vector<16x128xf32>
      %24 = arith.mulf %12, %23 : vector<16x128xf32>
      %cst_20 = arith.constant dense<0.000000e+00> : vector<16xf32>
      %25 = vector.multi_reduction <add>, %24, %cst_20 [1] : vector<16x128xf32> to vector<16xf32>
      %26 = vector.shape_cast %25 : vector<16xf32> to vector<16x1xf32>
      %cst_21 = arith.constant 1.000000e-30 : f32
      %27 = vector.broadcast %cst_21 : f32 to vector<16x1xf32>
      %28 = arith.maximumf %22, %27 : vector<16x1xf32>
      %29 = math.sqrt %28 : vector<16x1xf32>
      %30 = math.rsqrt %28 : vector<16x1xf32>
      %31 = arith.mulf %29, %19 : vector<16x1xf32>
      %cst_22 = arith.constant 1.000000e+00 : f32
      %32 = vector.broadcast %cst_22 : f32 to vector<16x1xf32>
      %33 = arith.mulf %32, %18 : vector<16x1xf32>
      %cst_23 = arith.constant -0.99999988 : f32
      %cst_24 = arith.constant 0.99999988 : f32
      %34 = vector.broadcast %cst_23 : f32 to vector<16x1xf32>
      %35 = arith.maximumf %34, %33 : vector<16x1xf32>
      %36 = vector.broadcast %cst_24 : f32 to vector<16x1xf32>
      %37 = arith.minimumf %36, %35 : vector<16x1xf32>
      %cst_25 = arith.constant 1.000000e+00 : f32
      %38 = vector.broadcast %cst_25 : f32 to vector<16x1xf32>
      %39 = arith.addf %38, %37 : vector<16x1xf32>
      %cst_26 = arith.constant 1.000000e+00 : f32
      %40 = vector.broadcast %cst_26 : f32 to vector<16x1xf32>
      %41 = arith.subf %40, %37 : vector<16x1xf32>
      %42 = arith.divf %39, %41 : vector<16x1xf32>
      %43 = math.log %42 : vector<16x1xf32>
      %cst_27 = arith.constant 5.000000e-01 : f32
      %44 = vector.broadcast %cst_27 : f32 to vector<16x1xf32>
      %45 = arith.mulf %44, %43 : vector<16x1xf32>
      %46 = arith.mulf %31, %45 : vector<16x1xf32>
      %cst_28 = arith.constant -1.500000e+01 : f32
      %cst_29 = arith.constant 1.500000e+01 : f32
      %47 = vector.broadcast %cst_28 : f32 to vector<16x1xf32>
      %48 = arith.maximumf %47, %46 : vector<16x1xf32>
      %49 = vector.broadcast %cst_29 : f32 to vector<16x1xf32>
      %50 = arith.minimumf %49, %48 : vector<16x1xf32>
      %51 = math.tanh %50 : vector<16x1xf32>
      %cst_30 = arith.constant 1.000000e+00 : f32
      %52 = vector.broadcast %cst_30 : f32 to vector<16x1xf32>
      %53 = arith.mulf %30, %52 : vector<16x1xf32>
      %54 = arith.mulf %51, %53 : vector<16x1xf32>
      %cst_31 = arith.constant 0.000000e+00 : f32
      %55 = vector.broadcast %cst_31 : f32 to vector<16x1xf32>
      %56 = arith.cmpf oeq, %22, %55 : vector<16x1xf32>
      %cst_32 = arith.constant 0.000000e+00 : f32
      %57 = vector.broadcast %cst_32 : f32 to vector<16x1xf32>
      %58 = arith.select %56, %57, %54 : vector<16x1xi1>, vector<16x1xf32>
      %59 = arith.mulf %58, %58 : vector<16x1xf32>
      %60 = arith.mulf %22, %59 : vector<16x1xf32>
      %cst_33 = arith.constant 1.000000e-30 : f32
      %61 = vector.broadcast %cst_33 : f32 to vector<16x1xf32>
      %62 = arith.maximumf %60, %61 : vector<16x1xf32>
      %63 = math.sqrt %62 : vector<16x1xf32>
      %cst_34 = arith.constant 0.995999991 : f32
      %64 = vector.broadcast %cst_34 : f32 to vector<16x1xf32>
      %65 = arith.cmpf ogt, %63, %64 : vector<16x1xf32>
      %66 = math.rsqrt %62 : vector<16x1xf32>
      %cst_35 = arith.constant 0.995999991 : f32
      %67 = vector.broadcast %cst_35 : f32 to vector<16x1xf32>
      %68 = arith.mulf %67, %66 : vector<16x1xf32>
      %cst_36 = arith.constant 1.000000e+00 : f32
      %69 = vector.broadcast %cst_36 : f32 to vector<16x1xf32>
      %70 = arith.select %65, %68, %69 : vector<16x1xi1>, vector<16x1xf32>
      %71 = arith.mulf %58, %70 : vector<16x1xf32>
      %72 = arith.mulf %71, %71 : vector<16x1xf32>
      %73 = arith.mulf %22, %72 : vector<16x1xf32>
      %74 = arith.mulf %26, %71 : vector<16x1xf32>
      %cst_37 = arith.constant 2.000000e+00 : f32
      %75 = vector.broadcast %cst_37 : f32 to vector<16x1xf32>
      %76 = arith.mulf %75, %74 : vector<16x1xf32>
      %cst_38 = arith.constant 1.000000e+00 : f32
      %77 = vector.broadcast %cst_38 : f32 to vector<16x1xf32>
      %78 = arith.addf %77, %76 : vector<16x1xf32>
      %cst_39 = arith.constant 1.000000e+00 : f32
      %79 = vector.broadcast %cst_39 : f32 to vector<16x1xf32>
      %80 = arith.mulf %79, %73 : vector<16x1xf32>
      %81 = vector.broadcast %14 : vector<1x1xf32> to vector<16x1xf32>
      %82 = arith.mulf %80, %81 : vector<16x1xf32>
      %83 = arith.addf %78, %82 : vector<16x1xf32>
      %cst_40 = arith.constant 1.000000e-15 : f32
      %84 = vector.broadcast %cst_40 : f32 to vector<16x1xf32>
      %85 = arith.maximumf %83, %84 : vector<16x1xf32>
      %86 = tpu.reciprocal %85 : vector<16x1xf32> -> vector<16x1xf32>
      %cst_41 = arith.constant 2.000000e+00 : f32
      %87 = vector.broadcast %cst_41 : f32 to vector<16x1xf32>
      %88 = arith.mulf %87, %74 : vector<16x1xf32>
      %cst_42 = arith.constant 1.000000e+00 : f32
      %89 = vector.broadcast %cst_42 : f32 to vector<16x1xf32>
      %90 = arith.addf %89, %88 : vector<16x1xf32>
      %cst_43 = arith.constant 1.000000e+00 : f32
      %91 = vector.broadcast %cst_43 : f32 to vector<1x1xf32>
      %92 = arith.mulf %91, %14 : vector<1x1xf32>
      %93 = vector.broadcast %92 : vector<1x1xf32> to vector<16x1xf32>
      %94 = arith.addf %90, %93 : vector<16x1xf32>
      %95 = arith.mulf %94, %86 : vector<16x1xf32>
      %cst_44 = arith.constant 1.000000e+00 : f32
      %96 = vector.broadcast %cst_44 : f32 to vector<16x1xf32>
      %97 = arith.mulf %96, %73 : vector<16x1xf32>
      %cst_45 = arith.constant 1.000000e+00 : f32
      %98 = vector.broadcast %cst_45 : f32 to vector<16x1xf32>
      %99 = arith.subf %98, %97 : vector<16x1xf32>
      %100 = arith.mulf %99, %86 : vector<16x1xf32>
      %101 = arith.mulf %95, %95 : vector<16x1xf32>
      %102 = arith.mulf %101, %73 : vector<16x1xf32>
      %cst_46 = arith.constant 2.000000e+00 : f32
      %103 = vector.broadcast %cst_46 : f32 to vector<16x1xf32>
      %104 = arith.mulf %103, %95 : vector<16x1xf32>
      %105 = arith.mulf %104, %100 : vector<16x1xf32>
      %106 = arith.mulf %105, %74 : vector<16x1xf32>
      %107 = arith.addf %102, %106 : vector<16x1xf32>
      %108 = arith.mulf %100, %100 : vector<16x1xf32>
      %109 = vector.broadcast %14 : vector<1x1xf32> to vector<16x1xf32>
      %110 = arith.mulf %108, %109 : vector<16x1xf32>
      %111 = arith.addf %107, %110 : vector<16x1xf32>
      %cst_47 = arith.constant 1.000000e-30 : f32
      %112 = vector.broadcast %cst_47 : f32 to vector<16x1xf32>
      %113 = arith.maximumf %111, %112 : vector<16x1xf32>
      %114 = math.sqrt %113 : vector<16x1xf32>
      %cst_48 = arith.constant 0.995999991 : f32
      %115 = vector.broadcast %cst_48 : f32 to vector<16x1xf32>
      %116 = arith.cmpf ogt, %114, %115 : vector<16x1xf32>
      %117 = math.rsqrt %113 : vector<16x1xf32>
      %cst_49 = arith.constant 0.995999991 : f32
      %118 = vector.broadcast %cst_49 : f32 to vector<16x1xf32>
      %119 = arith.mulf %118, %117 : vector<16x1xf32>
      %cst_50 = arith.constant 1.000000e+00 : f32
      %120 = vector.broadcast %cst_50 : f32 to vector<16x1xf32>
      %121 = arith.select %116, %119, %120 : vector<16x1xi1>, vector<16x1xf32>
      %122 = arith.mulf %121, %95 : vector<16x1xf32>
      %123 = arith.mulf %122, %71 : vector<16x1xf32>
      %124 = vector.broadcast %123 : vector<16x1xf32> to vector<16x128xf32>
      %125 = arith.mulf %124, %12 : vector<16x128xf32>
      %126 = arith.mulf %121, %100 : vector<16x1xf32>
      %127 = vector.broadcast %126 : vector<16x1xf32> to vector<16x128xf32>
      %128 = vector.broadcast %13 : vector<1x128xf32> to vector<16x128xf32>
      %129 = arith.mulf %127, %128 : vector<16x128xf32>
      %130 = arith.addf %125, %129 : vector<16x128xf32>
      %c0_51 = arith.constant 0 : index
      %c0_52 = arith.constant 0 : index
      %131 = vector.load %arg7[%c0_51, %c0_52] : memref<16x128xf32, #tpu.memory_space<vmem>>, vector<16x128xf32>
      tpu.vector_store %arg7[%c0_51, %c0_52], %130 {strides = array<i32>} : memref<16x128xf32, #tpu.memory_space<vmem>>, vector<16x128xf32>,
    } else {
    }
    return
  }
  func.func @transform_0(%arg0: i32, %arg1: i32) -> (i32, i32) {
    %c0_i32 = arith.constant 0 : i32
    return %arg0, %arg1 : i32, i32
  }
  func.func @transform_1(%arg0: i32, %arg1: i32) -> (i32, i32) {
    %c0_i32 = arith.constant 0 : i32
    %c0_i32_0 = arith.constant 0 : i32
    return %arg0, %c0_i32 : i32, i32
  }
  func.func @transform_2(%arg0: i32, %arg1: i32) -> (i32, i32) {
    %c0_i32 = arith.constant 0 : i32
    %c0_i32_0 = arith.constant 0 : i32
    return %arg1, %c0_i32 : i32, i32
  }
  func.func @transform_3(%arg0: i32, %arg1: i32) -> (i32, i32) {
    %c0_i32 = arith.constant 0 : i32
    %c0_i32_0 = arith.constant 0 : i32
    %c0_i32_1 = arith.constant 0 : i32
    return %c0_i32, %c0_i32_0 : i32, i32
  }
  func.func @transform_4(%arg0: i32, %arg1: i32) -> (i32, i32) {
    %c0_i32 = arith.constant 0 : i32
    %c0_i32_0 = arith.constant 0 : i32
    %c0_i32_1 = arith.constant 0 : i32
    return %c0_i32, %c0_i32_0 : i32, i32
  }
  func.func @transform_5(%arg0: i32, %arg1: i32) -> (i32, i32) {
    %c0_i32 = arith.constant 0 : i32
    %c0_i32_0 = arith.constant 0 : i32
    return %arg0, %c0_i32 : i32, i32
  }
}

</mosaic_0001>

<bundles_post_ra>
// kernel: tpu_custom_call.1
= control target key start
LH: loop header
LB: loop body
LE: loop exit
PB: predicated region body
PF: predicated region fallthrough
CT: control target
= control target key end

     0   :  { %s807_s0 = inlined_call_operand.vmem [shape: f32[16,128], index: 0, kind: input, shape index: {}]   ;;  %s808_s1 = inlined_call_operand.vmem [shape: f32[16,1], index: 1, kind: input, shape index: {}]   ;;  %s809_s2 = inlined_call_operand.hbm [shape: f32[128,128], index: 2, kind: input, shape index: {}]   ;;  %s810_s3 = inlined_call_operand.vmem [shape: f32[1,128], index: 3, kind: input, shape index: {}]   ;;  %s811_s4 = inlined_call_operand.<no memory space> [shape: f32[1,1], index: 4, kind: input, shape index: {}]   ;;  %s812_s5 = inlined_call_operand.hbm [shape: f32[16,128], index: 5, kind: output, shape index: {}]  }
   0x1   :  { %v10_v0 = vstv %s811_s4 }
   0x2   :  { %11 = vst [vmem:[#allocation3] sm:$0x1] %v10_v0 }
   0x3   :  { %12 = vsyncpa [#allocation5], 0 }
   0x4   :  { %13 = vsyncpa [#allocation6], 0  ;;  %s22_s22 = sshll.u32 %s809_s2, 4  ;;  %s618_s23 = smov [#allocation4]   ;;  %s23_s22 = int_to_ptr.hbm [resolvable:$true] %s22_s22 }
   0x5   :  { %s24_s24 = sshll.u32 %s618_s23, 4  ;;  %s619_s25 = smov 128   ;;  %s25_s24 = int_to_ptr.vmem [resolvable:$true] %s24_s24 }
   0x6   :  { %s620_s26 = smov 8  }
   0x7   :  { %30 = dma.hbm_to_vmem [thread:$0]  %s23_s22, 2048, %s25_s24, [#allocation5], %s619_s25, %s619_s25, %s620_s26  }
   0x8   :  { %614 = dma.done.wait [#allocation5], 2048  }
   0x9   :  { %615 = vsyncadd [#allocation5], 4294965248  ;;  %v64_v1 = vld [vmem:[#allocation4 + $0x78] sm:$0xff]  ;;  %v63_v2 = vld [vmem:[#allocation4 + $0x70] sm:$0xff]  ;;  %s491_s11 = sshll.u32 %s812_s5, 4  ;;  %s492_s11 = int_to_ptr.hbm [resolvable:$true] %s491_s11 }
   0xa   :  { %65 = vmatpush.msra.mxu0 %v64_v1  ;;  %508 = vmatpush.msra.mxu1 %v64_v1  ;;  %v62_v3 = vld [vmem:[#allocation4 + $0x68] sm:$0xff]  ;;  %v61_v4 = vld [vmem:[#allocation4 + $0x60] sm:$0xff]  ;;  %v60_v5 = vld [vmem:[#allocation4 + $0x58] sm:$0xff] }
   0xb   :  { %v59_v6 = vld [vmem:[#allocation4 + $0x50] sm:$0xff]  ;;  %v58_v7 = vld [vmem:[#allocation4 + $0x48] sm:$0xff]  ;;  %v57_v8 = vld [vmem:[#allocation4 + $0x40] sm:$0xff] }
   0xc   :  { %66 = vmatpush.msra.mxu0 %v63_v2  ;;  %509 = vmatpush.msra.mxu1 %v63_v2  ;;  %v56_v9 = vld [vmem:[#allocation4 + $0x38] sm:$0xff]  ;;  %v55_v10 = vld [vmem:[#allocation4 + $0x30] sm:$0xff]  ;;  %v54_v11 = vld [vmem:[#allocation4 + $0x28] sm:$0xff] }
   0xd   :  { %v53_v12 = vld [vmem:[#allocation4 + $0x20] sm:$0xff]  ;;  %v52_v13 = vld [vmem:[#allocation4 + $0x18] sm:$0xff]  ;;  %v51_v14 = vld [vmem:[#allocation4 + $0x10] sm:$0xff] }
   0xe   :  { %67 = vmatpush.msra.mxu0 %v62_v3  ;;  %510 = vmatpush.msra.mxu1 %v62_v3  ;;  %v50_v15 = vld [vmem:[#allocation4 + $0x8] sm:$0xff]  ;;  %v49_v16 = vld [vmem:[#allocation4] sm:$0xff]  ;;  %v671_v19 = vld [vmem:[%s810_s3] ss:$0 sm:$0xff] }
   0xf   :  { %v47_v17 = vld [vmem:[%s807_s0] sm:$0xff]  ;;  %v48_v18 = vld [vmem:[%s807_s0 + $0x8] sm:$0xff] }
  0x10   :  { %68 = vmatpush.msra.mxu0 %v61_v4  ;;  %511 = vmatpush.msra.mxu1 %v61_v4  ;;  %v99_v26 = vld [vmem:[%s808_s1] sm:$0xff]  ;;  %v100_v29 = vld [vmem:[%s808_s1 + $0x8] sm:$0xff]  ;;  %s622_s1 = smov [#allocation7]  }
  0x11   :  { %v688_v27 = vmax.f32 %v99_v26, 1e-30  ;;  %v698_v31 = vmax.f32 %v100_v29, 1e-30  ;;  %s489_s8 = sshll.u32 %s622_s1, 4  ;;  %s490_s8 = int_to_ptr.vmem [resolvable:$true] %s489_s8 }
  0x12   :  { %69 = vmatpush.msra.mxu0 %v60_v5  ;;  %512 = vmatpush.msra.mxu1 %v60_v5 }
  0x13   :  { %534 = vrsqrt.f32 %v688_v27  ;;  %vm110_vm0 = vcmp.eq.f32.partialorder %v688_v27, inf  ;;  %v113_v40 = vand.u32 2147483648, %v688_v27  ;;  %vm112_vm1 = vcmp.eq.f32.partialorder %v688_v27, 0.0 }
  0x14   :  { %70 = vmatpush.msra.mxu0 %v59_v6  ;;  %513 = vmatpush.msra.mxu1 %v59_v6  ;;  %536 = vrsqrt.f32 %v698_v31  ;;  %vm122_vm2 = vcmp.eq.f32.partialorder %v698_v31, inf  ;;  %v125_v48 = vand.u32 2147483648, %v698_v31  ;;  %vm124_vm3 = vcmp.eq.f32.partialorder %v698_v31, 0.0 }
  0x15   :  { %vm133_vm12 = vweird.f32 %v688_v27 }
  0x16   :  { %71 = vmatpush.msra.mxu0 %v58_v7  ;;  %514 = vmatpush.msra.mxu1 %v58_v7 }
  0x18   :  { %72 = vmatpush.msra.mxu0 %v57_v8  ;;  %515 = vmatpush.msra.mxu1 %v57_v8 }
  0x19   :  { %v691_v28 = vpop.eup %534 }
  0x1a   :  { %73 = vmatpush.msra.mxu0 %v56_v9  ;;  %516 = vmatpush.msra.mxu1 %v56_v9  ;;  %v104_v30 = vmul.f32 %v691_v28, %v688_v27  ;;  %v702_v35 = vpop.eup %536  ;;  %vm134_vm13 = vweird.f32 %v691_v28 }
  0x1b   :  { %v116_v37 = vmul.f32 %v702_v35, %v698_v31  ;;  %vm737_vm14 = vmor %vm133_vm12, %vm134_vm13 }
  0x1c   :  { %74 = vmatpush.msra.mxu0 %v55_v10  ;;  %517 = vmatpush.msra.mxu1 %v55_v10  ;;  %v105_v32 = vmul.f32 %v691_v28, %v104_v30 }
  0x1d   :  { %v117_v39 = vmul.f32 %v702_v35, %v116_v37 }
  0x1e   :  { %75 = vmatpush.msra.mxu0 %v54_v11  ;;  %518 = vmatpush.msra.mxu1 %v54_v11  ;;  %v106_v33 = vmul.f32 0.5, %v105_v32 }
  0x1f   :  { %v118_v41 = vmul.f32 0.5, %v117_v39 }
  0x20   :  { %76 = vmatpush.msra.mxu0 %v53_v12  ;;  %519 = vmatpush.msra.mxu1 %v53_v12  ;;  %v107_v34 = vsub.f32 1.5, %v106_v33 }
  0x21   :  { %v119_v43 = vsub.f32 1.5, %v118_v41 }
  0x22   :  { %77 = vmatpush.msra.mxu0 %v52_v13  ;;  %520 = vmatpush.msra.mxu1 %v52_v13  ;;  %v705_v36 = vmul.f32 %v691_v28, %v107_v34 }
  0x23   :  { %v717_v45 = vmul.f32 %v702_v35, %v119_v43 }
  0x24   :  { %78 = vmatpush.msra.mxu0 %v51_v14  ;;  %521 = vmatpush.msra.mxu1 %v51_v14  ;;  %v109_v38 = vmul.f32 %v705_v36, %v688_v27 }
  0x25   :  { %v121_v46 = vmul.f32 %v717_v45, %v698_v31 }
  0x26   :  { %79 = vmatpush.msra.mxu0 %v50_v15  ;;  %522 = vmatpush.msra.mxu1 %v50_v15  ;;  %v111_v42 = vsel %vm110_vm0, %v688_v27, %v109_v38  ;;  %v136_v27 = vsel %vm737_vm14, %v691_v28, %v705_v36 }
  0x27   :  { %v114_v44 = vsel %vm112_vm1, %v113_v40, %v111_v42  ;;  %v123_v49 = vsel %vm122_vm2, %v698_v31, %v121_v46  ;;  %vm143_vm1 = vweird.f32 %v698_v31  ;;  %vm144_vm2 = vweird.f32 %v702_v35 }
  0x28   :  { %80 = vmatpush.msra.mxu0 %v49_v16  ;;  %523 = vmatpush.msra.mxu1 %v49_v16  ;;  %v504_v47 = vclamps-f32 %v114_v44, 0.9999999  ;;  %v126_v51 = vsel %vm124_vm3, %v125_v48, %v123_v49  ;;  %vm145_vm3 = vmor %vm143_vm1, %vm144_vm2 }
  0x29   :  { %81 = vmatmul.f32.vlgmr.msra.gmra.mxu0 %v47_v17  ;;  %84 = vmatmul.f32.vlgmr.msra.gmra.mxu1 %v48_v18  ;;  %v505_v52 = vclamps-f32 %v126_v51, 0.9999999  ;;  %v146_v51 = vsel %vm145_vm3, %v702_v35, %v717_v45 }
  0x2a   :  { %v216_v50 = vsub.f32 1.0, %v504_v47  ;;  %v214_v4 = vadd.f32 1.0, %v504_v47 }
  0x2b   :  { %v217_v53 = vsub.f32 1.0, %v505_v52  ;;  %v215_v15 = vadd.f32 1.0, %v505_v52 }
  0x2c   :  { %538 = vrcp.f32 %v216_v50  ;;  %vm223_vm4 = vweird.f32 %v216_v50  ;;  %v229_v60 = vand.u32 2147483648, %v216_v50  ;;  %v227_v62 = vand.u32 2147483647, %v216_v50 }
  0x2d   :  { %540 = vrcp.f32 %v217_v53  ;;  %vm238_vm8 = vweird.f32 %v217_v53  ;;  %v244_v7 = vand.u32 2147483648, %v217_v53  ;;  %v242_v9 = vand.u32 2147483647, %v217_v53 }
  0x2e   :  { %v230_v0 = vor.u32 1.1754944e-38, %v229_v60  ;;  %vm228_vm7 = vcmp.eq.f32.partialorder %v227_v62, 8.507059e+37 }
  0x2f   :  { %v245_v11 = vor.u32 1.1754944e-38, %v244_v7  ;;  %vm243_vm11 = vcmp.eq.f32.partialorder %v242_v9, 8.507059e+37 }
  0x32   :  { %v539_v54 = vpop.eup %538 }
  0x33   :  { %v219_v55 = vmul.f32 %v539_v54, %v216_v50  ;;  %v541_v57 = vpop.eup %540  ;;  %vm224_vm5 = vweird.f32 %v539_v54 }
  0x34   :  { %v234_v59 = vmul.f32 %v541_v57, %v217_v53  ;;  %vm225_vm6 = vmor %vm223_vm4, %vm224_vm5  ;;  %vm239_vm9 = vweird.f32 %v541_v57 }
  0x35   :  { %v220_v56 = vsub.f32 1.0, %v219_v55  ;;  %vm240_vm10 = vmor %vm238_vm8, %vm239_vm9 }
  0x36   :  { %v235_v63 = vsub.f32 1.0, %v234_v59 }
  0x37   :  { %v221_v58 = vmul.f32 %v539_v54, %v220_v56 }
  0x38   :  { %v236_v2 = vmul.f32 %v541_v57, %v235_v63 }
  0x39   :  { %v222_v61 = vadd.f32 %v539_v54, %v221_v58 }
  0x3a   :  { %v237_v8 = vadd.f32 %v541_v57, %v236_v2 }
  0x3b   :  { %v226_v1 = vsel %vm225_vm6, %v539_v54, %v222_v61 }
  0x3c   :  { %v231_v6 = vsel %vm228_vm7, %v230_v0, %v226_v1  ;;  %v241_v12 = vsel %vm240_vm10, %v541_v57, %v237_v8 }
  0x3d   :  { %v232_v10 = vmul.f32 %v231_v6, %v214_v4  ;;  %v246_v18 = vsel %vm243_vm11, %v245_v11, %v241_v12  ;;  %v621_v11 = vmov 0  }
  0x3e   :  { %530 = vset.pattern.permute.xlu0 %v621_v11  ;;  %529 = vset.pattern.permute.xlu2 %v621_v11 }
  0x3f   :  { %531 = vset.pattern.permute.xlu1 %v621_v11 }
  0xa6   :  { %v673_v20 = vpop.f32.mrf.mxu0  ;;  %v679_v23 = vpop.f32.mrf.mxu1 }
  0xa7   :  { %v156_v21 = vmul.f32 %v671_v19, %v673_v20  ;;  %v147_v22 = vmul.f32 %v673_v20, %v673_v20  ;;  %v157_v24 = vmul.f32 %v671_v19, %v679_v23  ;;  %v148_v25 = vmul.f32 %v679_v23, %v679_v23 }
  0xa9   :  { %158 = vadd.xlane.f32.xlu1 %v156_v21  ;;  %149 = vadd.xlane.f32.xlu0 %v147_v22  ;;  %v247_v22 = vmul.f32 %v246_v18, %v215_v15 }
  0xb1   :  { %160 = vadd.xlane.f32.xlu1 %v157_v24  ;;  %151 = vadd.xlane.f32.xlu0 %v148_v25 }
 0x11c   :  { %v725_v3 = vpop.xlane.xlu0 %149 }
 0x11d   :  { %v728_v5 = vmax.f32 %v725_v3, 1e-30  ;;  %vm264_vm9 = vcmp.eq.f32.partialorder %v725_v3, 0.0 }
 0x11f   :  { %542 = vrsqrt.f32 %v728_v5  ;;  %vm171_vm15 = vcmp.eq.f32.partialorder %v728_v5, inf  ;;  %v174_v39 = vand.u32 2147483648, %v728_v5  ;;  %vm173_vm0 = vcmp.eq.f32.partialorder %v728_v5, 0.0 }
 0x120   :  { %544 = vlog2.f32 %v232_v10  ;;  %vm194_vm7 = vweird.f32 %v728_v5 }
 0x124   :  { %v731_v13 = vpop.xlane.xlu0 %151 }
 0x125   :  { %v543_v14 = vpop.eup %542  ;;  %v163_v16 = vmax.f32 %v731_v13, 1e-30  ;;  %vm265_vm13 = vcmp.eq.f32.partialorder %v731_v13, 0.0 }
 0x126   :  { %v165_v17 = vmul.f32 %v543_v14, %v728_v5  ;;  %v545_v25 = vpop.eup %544  ;;  %vm195_vm6 = vweird.f32 %v543_v14 }
 0x127   :  { %546 = vrsqrt.f32 %v163_v16  ;;  %v249_v32 = vmul.f32 0.6931472, %v545_v25  ;;  %vm183_vm4 = vcmp.eq.f32.partialorder %v163_v16, inf  ;;  %v186_v52 = vand.u32 2147483648, %v163_v16  ;;  %vm196_vm8 = vmor %vm194_vm7, %vm195_vm6 }
 0x128   :  { %v166_v21 = vmul.f32 %v543_v14, %v165_v17  ;;  %548 = vlog2.f32 %v247_v22  ;;  %vm185_vm5 = vcmp.eq.f32.partialorder %v163_v16, 0.0  ;;  %vm204_vm11 = vweird.f32 %v163_v16 }
 0x129   :  { %v252_v40 = vmul.f32 0.5, %v249_v32  ;;  %v159_v32 = vpop.xlane.xlu1 %158 }
 0x12a   :  { %v167_v24 = vmul.f32 0.5, %v166_v21 }
 0x12c   :  { %v168_v26 = vsub.f32 1.5, %v167_v24 }
 0x12d   :  { %v547_v29 = vpop.eup %546 }
 0x12e   :  { %v169_v33 = vmul.f32 %v543_v14, %v168_v26  ;;  %v177_v34 = vmul.f32 %v547_v29, %v163_v16  ;;  %v549_v43 = vpop.eup %548  ;;  %vm205_vm10 = vweird.f32 %v547_v29 }
 0x12f   :  { %v251_v28 = vmul.f32 0.6931472, %v549_v43  ;;  %vm206_vm12 = vmor %vm204_vm11, %vm205_vm10 }
 0x130   :  { %v170_v37 = vmul.f32 %v169_v33, %v728_v5  ;;  %v178_v38 = vmul.f32 %v547_v29, %v177_v34  ;;  %v197_v58 = vsel %vm196_vm8, %v543_v14, %v169_v33 }
 0x131   :  { %v253_v53 = vmul.f32 0.5, %v251_v28 }
 0x132   :  { %v172_v41 = vsel %vm171_vm15, %v728_v5, %v170_v37  ;;  %v179_v42 = vmul.f32 0.5, %v178_v38  ;;  %v761_v38 = vld [vmem:[#allocation3] ss:$0 sm:$0xff] }
 0x133   :  { %v175_v44 = vsel %vm173_vm0, %v174_v39, %v172_v41 }
 0x134   :  { %v208_v46 = vmul.f32 %v175_v44, %v136_v27  ;;  %v180_v47 = vsub.f32 1.5, %v179_v42 }
 0x136   :  { %v254_v48 = vmul.f32 %v252_v40, %v208_v46  ;;  %v181_v36 = vmul.f32 %v547_v29, %v180_v47 }
 0x138   :  { %v506_v49 = vclamps-f32 %v254_v48, 15.0  ;;  %v182_v50 = vmul.f32 %v181_v36, %v163_v16  ;;  %v207_v0 = vsel %vm206_vm12, %v547_v29, %v181_v36 }
 0x13a   :  { %550 = vtanh.f32 %v506_v49  ;;  %v184_v54 = vsel %vm183_vm4, %v163_v16, %v182_v50 }
 0x13b   :  { %v187_v31 = vsel %vm185_vm5, %v186_v52, %v184_v54  ;;  %v161_v52 = vpop.xlane.xlu1 %160 }
 0x13c   :  { %v209_v55 = vmul.f32 %v187_v31, %v146_v51 }
 0x13e   :  { %v255_v56 = vmul.f32 %v253_v53, %v209_v55 }
 0x140   :  { %v551_v57 = vpop.eup %550  ;;  %v507_v59 = vclamps-f32 %v255_v56, 15.0 }
 0x141   :  { %v262_v60 = vmul.f32 %v551_v57, %v197_v58 }
 0x142   :  { %552 = vtanh.f32 %v507_v59 }
 0x143   :  { %v266_v35 = vsel %vm264_vm9, 0.0, %v262_v60 }
 0x144   :  { %v268_v45 = vmul.f32 %v266_v35, %v266_v35 }
 0x146   :  { %v270_v61 = vmul.f32 %v268_v45, %v725_v3 }
 0x148   :  { %v553_v62 = vpop.eup %552  ;;  %v272_v63 = vmax.f32 %v270_v61, 1e-30 }
 0x149   :  { %v263_v1 = vmul.f32 %v553_v62, %v207_v0 }
 0x14a   :  { %554 = vrsqrt.f32 %v272_v63  ;;  %vm306_vm15 = vweird.f32 %v272_v63  ;;  %vm281_vm1 = vcmp.eq.f32.partialorder %v272_v63, inf  ;;  %v284_v22 = vand.u32 2147483648, %v272_v63 }
 0x14b   :  { %v267_v2 = vsel %vm265_vm13, 0.0, %v263_v1  ;;  %vm283_vm2 = vcmp.eq.f32.partialorder %v272_v63, 0.0 }
 0x14c   :  { %v269_v4 = vmul.f32 %v267_v2, %v267_v2 }
 0x14e   :  { %v271_v5 = vmul.f32 %v269_v4, %v731_v13 }
 0x150   :  { %v555_v6 = vpop.eup %554  ;;  %v273_v7 = vmax.f32 %v271_v5, 1e-30 }
 0x151   :  { %v275_v8 = vmul.f32 %v555_v6, %v272_v63  ;;  %vm307_vm14 = vweird.f32 %v555_v6 }
 0x152   :  { %556 = vrsqrt.f32 %v273_v7  ;;  %vm308_vm0 = vmor %vm306_vm15, %vm307_vm14  ;;  %vm316_vm5 = vweird.f32 %v273_v7  ;;  %vm293_vm7 = vcmp.eq.f32.partialorder %v273_v7, inf  ;;  %v296_v42 = vand.u32 2147483648, %v273_v7 }
 0x153   :  { %v276_v9 = vmul.f32 %v555_v6, %v275_v8  ;;  %vm295_vm8 = vcmp.eq.f32.partialorder %v273_v7, 0.0 }
 0x155   :  { %v277_v10 = vmul.f32 0.5, %v276_v9 }
 0x157   :  { %v278_v12 = vsub.f32 1.5, %v277_v10 }
 0x158   :  { %v557_v14 = vpop.eup %556 }
 0x159   :  { %v279_v15 = vmul.f32 %v555_v6, %v278_v12  ;;  %v287_v16 = vmul.f32 %v557_v14, %v273_v7  ;;  %vm317_vm4 = vweird.f32 %v557_v14 }
 0x15a   :  { %vm318_vm6 = vmor %vm316_vm5, %vm317_vm4 }
 0x15b   :  { %v280_v17 = vmul.f32 %v279_v15, %v272_v63  ;;  %v309_v18 = vsel %vm308_vm0, %v555_v6, %v279_v15  ;;  %v288_v21 = vmul.f32 %v557_v14, %v287_v16 }
 0x15c   :  { %v320_v29 = vmul.f32 0.996, %v309_v18 }
 0x15d   :  { %v282_v24 = vsel %vm281_vm1, %v272_v63, %v280_v17  ;;  %v289_v25 = vmul.f32 0.5, %v288_v21 }
 0x15e   :  { %v285_v26 = vsel %vm283_vm2, %v284_v22, %v282_v24 }
 0x15f   :  { %vm298_vm3 = vcmp.gt.f32.partialorder %v285_v26, 0.996  ;;  %v290_v30 = vsub.f32 1.5, %v289_v25 }
 0x160   :  { %v322_v33 = vsel %vm298_vm3, %v320_v29, 1.0 }
 0x161   :  { %v759_v34 = vmul.f32 %v322_v33, %v266_v35  ;;  %v291_v37 = vmul.f32 %v557_v14, %v290_v30 }
 0x163   :  { %v326_v27 = vmul.f32 %v759_v34, %v759_v34  ;;  %v766_v39 = vmul.f32 %v759_v34, %v159_v32  ;;  %v292_v40 = vmul.f32 %v291_v37, %v273_v7  ;;  %v319_v41 = vsel %vm318_vm6, %v557_v14, %v291_v37 }
 0x164   :  { %v321_v48 = vmul.f32 0.996, %v319_v41 }
 0x165   :  { %v328_v43 = vmul.f32 %v326_v27, %v725_v3  ;;  %v332_v44 = vmul.f32 2.0, %v766_v39  ;;  %v294_v46 = vsel %vm293_vm7, %v273_v7, %v292_v40 }
 0x166   :  { %v297_v47 = vsel %vm295_vm8, %v296_v42, %v294_v46 }
 0x167   :  { %v334_v28 = vadd.f32 1.0, %v332_v44  ;;  %v339_v36 = vmul.f32 %v761_v38, %v328_v43  ;;  %vm299_vm9 = vcmp.gt.f32.partialorder %v297_v47, 0.996 }
 0x168   :  { %v323_v49 = vsel %vm299_vm9, %v321_v48, 1.0 }
 0x169   :  { %v341_v50 = vadd.f32 %v339_v36, %v334_v28  ;;  %v771_v51 = vmul.f32 %v323_v49, %v267_v2  ;;  %v377_v2 = vsub.f32 1.0, %v328_v43  ;;  %v373_v5 = vadd.f32 %v761_v38, %v334_v28 }
 0x16b   :  { %v343_v53 = vmax.f32 %v341_v50, 1e-15  ;;  %v327_v54 = vmul.f32 %v771_v51, %v771_v51  ;;  %v331_v3 = vmul.f32 %v771_v51, %v161_v52 }
 0x16d   :  { %558 = vrcp.f32 %v343_v53  ;;  %v329_v31 = vmul.f32 %v327_v54, %v731_v13  ;;  %v333_v55 = vmul.f32 2.0, %v331_v3  ;;  %v356_v61 = vand.u32 2147483648, %v343_v53 }
 0x16e   :  { %v354_v63 = vand.u32 2147483647, %v343_v53  ;;  %vm350_vm11 = vweird.f32 %v343_v53 }
 0x16f   :  { %v335_v56 = vadd.f32 1.0, %v333_v55  ;;  %v340_v57 = vmul.f32 %v761_v38, %v329_v31  ;;  %v357_v13 = vor.u32 1.1754944e-38, %v356_v61  ;;  %v378_v30 = vsub.f32 1.0, %v329_v31 }
 0x170   :  { %vm355_vm13 = vcmp.eq.f32.partialorder %v354_v63, 8.507059e+37 }
 0x171   :  { %v342_v58 = vadd.f32 %v340_v57, %v335_v56  ;;  %v374_v24 = vadd.f32 %v761_v38, %v335_v56 }
 0x173   :  { %v559_v59 = vpop.eup %558  ;;  %v344_v60 = vmax.f32 %v342_v58, 1e-15 }
 0x174   :  { %v346_v35 = vmul.f32 %v559_v59, %v343_v53  ;;  %vm351_vm10 = vweird.f32 %v559_v59 }
 0x175   :  { %560 = vrcp.f32 %v344_v60  ;;  %vm352_vm12 = vmor %vm350_vm11, %vm351_vm10  ;;  %v368_v11 = vand.u32 2147483647, %v344_v60  ;;  %v370_v12 = vand.u32 2147483648, %v344_v60  ;;  %vm364_vm15 = vweird.f32 %v344_v60 }
 0x176   :  { %v347_v45 = vsub.f32 1.0, %v346_v35 }
 0x177   :  { %v371_v22 = vor.u32 1.1754944e-38, %v370_v12  ;;  %vm369_vm1 = vcmp.eq.f32.partialorder %v368_v11, 8.507059e+37 }
 0x178   :  { %v348_v62 = vmul.f32 %v559_v59, %v347_v45 }
 0x17a   :  { %v349_v0 = vadd.f32 %v559_v59, %v348_v62 }
 0x17b   :  { %v561_v1 = vpop.eup %560 }
 0x17c   :  { %v353_v4 = vsel %vm352_vm12, %v559_v59, %v349_v0  ;;  %v360_v6 = vmul.f32 %v561_v1, %v344_v60  ;;  %vm365_vm14 = vweird.f32 %v561_v1 }
 0x17d   :  { %v358_v7 = vsel %vm355_vm13, %v357_v13, %v353_v4  ;;  %vm366_vm0 = vmor %vm364_vm15, %vm365_vm14 }
 0x17e   :  { %v779_v8 = vmul.f32 %v373_v5, %v358_v7  ;;  %v781_v9 = vmul.f32 %v377_v2, %v358_v7  ;;  %v361_v10 = vsub.f32 1.0, %v360_v6 }
 0x180   :  { %v381_v14 = vmul.f32 %v779_v8, %v779_v8  ;;  %v385_v15 = vmul.f32 2.0, %v779_v8  ;;  %v362_v16 = vmul.f32 %v561_v1, %v361_v10  ;;  %v393_v18 = vmul.f32 %v781_v9, %v781_v9 }
 0x182   :  { %v387_v17 = vmul.f32 %v385_v15, %v781_v9  ;;  %v363_v21 = vadd.f32 %v561_v1, %v362_v16  ;;  %v383_v25 = vmul.f32 %v381_v14, %v328_v43  ;;  %v395_v37 = vmul.f32 %v761_v38, %v393_v18 }
 0x184   :  { %v389_v26 = vmul.f32 %v387_v17, %v766_v39  ;;  %v367_v29 = vsel %vm366_vm0, %v561_v1, %v363_v21 }
 0x185   :  { %v372_v32 = vsel %vm369_vm1, %v371_v22, %v367_v29 }
 0x186   :  { %v391_v33 = vadd.f32 %v389_v26, %v383_v25  ;;  %v376_v27 = vmul.f32 %v374_v24, %v372_v32  ;;  %v380_v40 = vmul.f32 %v378_v30, %v372_v32 }
 0x188   :  { %v397_v41 = vadd.f32 %v395_v37, %v391_v33  ;;  %v386_v42 = vmul.f32 2.0, %v376_v27  ;;  %v382_v44 = vmul.f32 %v376_v27, %v376_v27  ;;  %v394_v48 = vmul.f32 %v380_v40, %v380_v40 }
 0x18a   :  { %v399_v46 = vmax.f32 %v397_v41, 1e-30  ;;  %v388_v47 = vmul.f32 %v386_v42, %v380_v40  ;;  %v384_v28 = vmul.f32 %v382_v44, %v329_v31  ;;  %v396_v39 = vmul.f32 %v761_v38, %v394_v48 }
 0x18c   :  { %562 = vrsqrt.f32 %v399_v46  ;;  %v390_v43 = vmul.f32 %v388_v47, %v331_v3  ;;  %vm433_vm3 = vweird.f32 %v399_v46  ;;  %vm408_vm5 = vcmp.eq.f32.partialorder %v399_v46, inf }
 0x18d   :  { %v411_v3 = vand.u32 2147483648, %v399_v46  ;;  %vm410_vm6 = vcmp.eq.f32.partialorder %v399_v46, 0.0 }
 0x18e   :  { %v392_v36 = vadd.f32 %v390_v43, %v384_v28 }
 0x190   :  { %v398_v49 = vadd.f32 %v396_v39, %v392_v36 }
 0x192   :  { %v563_v50 = vpop.eup %562  ;;  %v400_v53 = vmax.f32 %v398_v49, 1e-30 }
 0x193   :  { %v402_v52 = vmul.f32 %v563_v50, %v399_v46  ;;  %vm434_vm2 = vweird.f32 %v563_v50 }
 0x194   :  { %564 = vrsqrt.f32 %v400_v53  ;;  %vm435_vm4 = vmor %vm433_vm3, %vm434_vm2  ;;  %vm443_vm9 = vweird.f32 %v400_v53  ;;  %vm420_vm11 = vcmp.eq.f32.partialorder %v400_v53, inf  ;;  %v423_v7 = vand.u32 2147483648, %v400_v53 }
 0x195   :  { %v403_v54 = vmul.f32 %v563_v50, %v402_v52  ;;  %vm422_vm12 = vcmp.eq.f32.partialorder %v400_v53, 0.0 }
 0x197   :  { %v404_v55 = vmul.f32 0.5, %v403_v54 }
 0x199   :  { %v405_v56 = vsub.f32 1.5, %v404_v55 }
 0x19a   :  { %v565_v57 = vpop.eup %564 }
 0x19b   :  { %v406_v58 = vmul.f32 %v563_v50, %v405_v56  ;;  %v414_v59 = vmul.f32 %v565_v57, %v400_v53  ;;  %vm444_vm8 = vweird.f32 %v565_v57 }
 0x19c   :  { %vm445_vm10 = vmor %vm443_vm9, %vm444_vm8 }
 0x19d   :  { %v407_v60 = vmul.f32 %v406_v58, %v399_v46  ;;  %v436_v31 = vsel %vm435_vm4, %v563_v50, %v406_v58  ;;  %v415_v35 = vmul.f32 %v565_v57, %v414_v59 }
 0x19e   :  { %v447_v61 = vmul.f32 0.996, %v436_v31 }
 0x19f   :  { %v409_v38 = vsel %vm408_vm5, %v399_v46, %v407_v60  ;;  %v416_v62 = vmul.f32 0.5, %v415_v35 }
 0x1a0   :  { %v412_v45 = vsel %vm410_vm6, %v411_v3, %v409_v38 }
 0x1a1   :  { %vm425_vm7 = vcmp.gt.f32.partialorder %v412_v45, 0.996  ;;  %v417_v0 = vsub.f32 1.5, %v416_v62 }
 0x1a2   :  { %v449_v63 = vsel %vm425_vm7, %v447_v61, 1.0 }
 0x1a3   :  { %v467_v1 = vmul.f32 %v449_v63, %v781_v9  ;;  %v451_v2 = vmul.f32 %v449_v63, %v779_v8  ;;  %v418_v13 = vmul.f32 %v565_v57, %v417_v0 }
 0x1a5   :  { %471 = vperm.xlu0 %530, %v467_v1   ;;  %v453_v4 = vmul.f32 %v451_v2, %v759_v34  ;;  %v419_v5 = vmul.f32 %v418_v13, %v400_v53  ;;  %v446_v6 = vsel %vm445_vm10, %v565_v57, %v418_v13 }
 0x1a6   :  { %v448_v12 = vmul.f32 0.996, %v446_v6 }
 0x1a7   :  { %457 = vperm.xlu2 %529, %v453_v4   ;;  %v421_v10 = vsel %vm420_vm11, %v400_v53, %v419_v5 }
 0x1a8   :  { %v424_v11 = vsel %vm422_vm12, %v423_v7, %v421_v10 }
 0x1a9   :  { %vm426_vm13 = vcmp.gt.f32.partialorder %v424_v11, 0.996 }
 0x1aa   :  { %v450_v14 = vsel %vm426_vm13, %v448_v12, 1.0 }
 0x1ab   :  { %v468_v9 = vmul.f32 %v450_v14, %v380_v40  ;;  %v452_v15 = vmul.f32 %v450_v14, %v376_v27 }
 0x1ad   :  { %476 = vperm.xlu1 %531, %v468_v9   ;;  %v454_v8 = vmul.f32 %v452_v15, %v771_v51 }
 0x1af   :  { %462 = vperm.xlu2 %529, %v454_v8  }
 0x201   :  { %v458_v16 = vpop.permute.xlu2 %457 }
 0x202   :  { %v465_v17 = vmul.f32 %v458_v16, %v673_v20 }
 0x209   :  { %v463_v22 = vpop.permute.xlu2 %462 }
 0x20a   :  { %v466_v25 = vmul.f32 %v463_v22, %v679_v23 }
 0x217   :  { %v472_v34 = vpop.permute.xlu0 %471 }
 0x218   :  { %v479_v18 = vmul.f32 %v671_v19, %v472_v34 }
 0x21a   :  { %v481_v21 = vadd.f32 %v479_v18, %v465_v17 }
 0x21c   :  { %483 = vst [vmem:[#allocation7] sm:$0xff] %v481_v21 }
 0x21f   :  { %v477_v24 = vpop.permute.xlu1 %476 }
 0x220   :  { %v480_v51 = vmul.f32 %v671_v19, %v477_v24 }
 0x222   :  { %v482_v26 = vadd.f32 %v480_v51, %v466_v25 }
 0x224   :  { %484 = vst [vmem:[#allocation7 + $0x8] sm:$0xff] %v482_v26 }
 0x225   :  { %497 = dma.vmem_to_hbm [thread:$0]  %s490_s8, 256, %s492_s11, [#allocation6], %s619_s25, %s619_s25, %s620_s26  }
 0x226   :  { %616 = dma.done.wait [#allocation6], 256  }
 0x227   :  { %617 = vsyncadd [#allocation6], 4294967040 }
 0x228   :  { %502 = vsyncpa [#allocation5], 1 }
 0x229   :  { %503 = vsyncpa [#allocation6], 1 }

</bundles_post_ra>
